<compile_context>
chip_gen: v5e
topology: v5e:2x2
jax: 0.10.0
libtpu: 0.0.40
codegen_flags: <defaults>
</compile_context>

<pallas_src>
import functools

import numpy as np
import jax
import jax.numpy as jnp
from jax.experimental import pallas as pl
from jax.experimental.pallas import tpu as pltpu

P_DROP = 0.1  # nn.Dropout(p=0.1)


def get_position_embedding(max_len: int, dim_model: int) -> jnp.ndarray:
    """Deterministic sinusoidal buffer, identical to the module's __init__."""
    position = np.arange(max_len)[:, np.newaxis]
    i = np.arange(dim_model)[np.newaxis, :]
    angle_rates = 1.0 / np.power(10000, 2 * (i // 2) / np.float32(dim_model))
    angle_rads = position * angle_rates
    sines = np.sin(angle_rads[:, 0::2])
    coses = np.cos(angle_rads[:, 1::2])
    pe = np.concatenate([sines, coses], axis=-1)[np.newaxis, ...]
    return jnp.asarray(pe, dtype=jnp.float32)  # [1, max_len, dim_model]


# ---------------------------------------------------------------------------
# Kernels (operate on the flattened, lane-dense (rows, batch*d_model) view).
# ---------------------------------------------------------------------------
def _pos_enc_eval_kernel(x_ref, pe_ref, o_ref):
    # x_ref: (ts, BD) tile; pe_ref: (1, BD) resident row -> broadcast over rows.
    o_ref[...] = x_ref[...] + pe_ref[...]


def _pos_enc_train_kernel(x_ref, pe_ref, bits_ref, o_ref, *, p: float):
    y = x_ref[...] + pe_ref[...]
    # Inverted dropout (matches torch.nn.Dropout in training mode):
    # keep with prob (1 - p), scale kept values by 1 / (1 - p).
    thresh = jnp.uint32(min(int(round(p * 2.0 ** 32)), 2 ** 32 - 1))
    keep = bits_ref[...] >= thresh            # P(keep) = 1 - p (full 32-bit compare)
    scale = jnp.asarray(1.0 / (1.0 - p), dtype=y.dtype)
    o_ref[...] = jnp.where(keep, y * scale, jnp.zeros_like(y))


# ---------------------------------------------------------------------------
# Wrapper
# ---------------------------------------------------------------------------
def _choose_row_tile(num_rows: int, bytes_per_row: int,
                     budget_bytes: int = 24 << 20) -> int:
    """Largest row tile whose double-buffered streamed tiles fit the VMEM budget.

    The budget is sized with headroom under v7x's 32 MiB scoped-VMEM default
    (64 MiB physical); v5e/v6e have more, so the same tile is safe everywhere.
    """
    max_rows = max(8, budget_bytes // (2 * max(bytes_per_row, 1)))  # 2x: double-buffer
    max_rows = min(max_rows, 2048)   # >=512-row tiles already hit ~85% of HBM roofline
    if max_rows >= num_rows:
        return num_rows              # one block covers the whole (small) axis
    return max(8, (max_rows // 8) * 8)   # respect the (8, 128) block constraint


def position_encoding_forward(x, pe, *, training: bool = False, p: float = P_DROP,
                              dropout_key=None):
    """x: [seq_len, batch, d_model]; pe: [1, max_len, d_model] (max_len == batch or 1)."""
    S, B, D = x.shape
    assert pe.shape[0] == 1 and pe.shape[2] == D
    assert pe.shape[1] in (B, 1), (
        "faithful to the reference code, the PE buffer broadcasts against the "
        "batch axis, so batch_size must equal max_len (or max_len == 1)")
    BD = B * D

    # Lane-dense 2-D views: rows = seq positions, cols = batch * d_model.
    x2 = x.reshape(S, BD)
    pe_row = jnp.broadcast_to(pe[0].astype(x.dtype), (B, D)).reshape(1, BD)

    apply_dropout = bool(training) and p > 0.0
    bytes_per_row = BD * (2 * x.dtype.itemsize + (4 if apply_dropout else 0))
    ts = _choose_row_tile(S, bytes_per_row)
    grid = (pl.cdiv(S, ts),)

    row_spec = pl.BlockSpec((ts, BD), lambda i: (i, 0))
    pe_spec = pl.BlockSpec((1, BD), lambda i: (0, 0))   # constant index: DMA'd once

    if apply_dropout:
        if dropout_key is None:
            dropout_key = jax.random.PRNGKey(0)
        bits = jax.random.bits(dropout_key, (S, BD), dtype=jnp.uint32)
        kernel = functools.partial(_pos_enc_train_kernel, p=p)
        in_specs = [row_spec, pe_spec, row_spec]
        args = (x2, pe_row, bits)
    else:
        kernel = _pos_enc_eval_kernel
        in_specs = [row_spec, pe_spec]
        args = (x2, pe_row)

    out2 = pl.pallas_call(
        kernel,
        out_shape=jax.ShapeDtypeStruct((S, BD), x.dtype),
        grid=grid,
        in_specs=in_specs,
        out_specs=row_spec,
        compiler_params=pltpu.CompilerParams(
            # Independent row tiles: 'parallel' lets v7x shard the grid across
            # its 2 TensorCores; neutral on v5e/v6e (single TC).
            dimension_semantics=("parallel",),
            vmem_limit_bytes=32 * 1024 * 1024,
        ),
        # TODO(synk): add input_output_aliases={0: 0} when the caller donates x,
        # to drop the extra HBM output allocation for large activations.
    )(*args)
    return out2.reshape(S, B, D)


# ---------------------------------------------------------------------------
# Self-test
# ---------------------------------------------------------------------------
if __name__ == "__main__":
    max_len = 8
    d_model = 32
    seq_len = 8
    batch = max_len  # required by the original module's broadcast (see note above)

    key = jax.random.PRNGKey(0)
    kx, kd = jax.random.split(key)
    x = jax.random.normal(kx, (seq_len, batch, d_model), dtype=jnp.float32)
    pe = get_position_embedding(max_len, d_model)

    # Eval mode (dropout == identity): verify against a pure-JAX reference that
    # mirrors the PyTorch indexing exactly.
    out = jax.block_until_ready(position_encoding_forward(x, pe, training=False))
    ref = x + pe[:seq_len, :]
    np.testing.assert_allclose(np.asarray(out), np.asarray(ref), rtol=1e-6, atol=1e-6)

    # Training mode: every output element must be either 0 (dropped) or
    # (x + pe) / (1 - p) (kept, inverted-dropout scaled).
    out_tr = jax.block_until_ready(
        position_encoding_forward(x, pe, training=True, dropout_key=kd))
    assert out_tr.shape == x.shape and out_tr.dtype == x.dtype
    ref_np = np.asarray(ref)
    out_np = np.asarray(out_tr)
    scaled = ref_np / (1.0 - P_DROP)
    ok = np.isclose(out_np, 0.0, atol=1e-6) | np.isclose(out_np, scaled,
                                                         rtol=1e-5, atol=1e-5)
    assert ok.all(), "training-mode output is not a scaled/zeroed copy of (x + pe)"
    drop_frac = float(np.isclose(out_np, 0.0, atol=1e-6).mean())
    assert 0.0 <= drop_frac < 0.5, f"implausible dropout fraction {drop_frac}"

    print("KERNEL_OK")
</pallas_src>

<mosaic_0001>
module attributes {stable_mosaic.version = 11 : i64} {
  func.func @_pos_enc_eval_kernel(%arg0: i32, %arg1: memref<8x256xf32, #tpu.memory_space<vmem>>, %arg2: memref<1x256xf32, #tpu.memory_space<vmem>>, %arg3: memref<8x256xf32, #tpu.memory_space<vmem>>) attributes {dimension_semantics = [#tpu.dimension_semantics<parallel>], iteration_bounds = array<i64: 1>, scalar_prefetch = 0 : i64, scratch_operands = 0 : i64, tpu.core_type = #tpu.core_type<tc>, window_params = [{transform_indices = @transform_0, window_bounds = array<i64: 8, 256>}, {pipeline_mode = #tpu.pipeline_mode<synchronous>, transform_indices = @transform_1, window_bounds = array<i64: 1, 256>}, {transform_indices = @transform_2, window_bounds = array<i64: 8, 256>}]} {
    %c0 = arith.constant 0 : index
    %c0_0 = arith.constant 0 : index
    %0 = vector.load %arg1[%c0, %c0_0] : memref<8x256xf32, #tpu.memory_space<vmem>>, vector<8x256xf32>
    %c0_1 = arith.constant 0 : index
    %c0_2 = arith.constant 0 : index
    %1 = vector.load %arg2[%c0_1, %c0_2] : memref<1x256xf32, #tpu.memory_space<vmem>>, vector<1x256xf32>
    %2 = vector.broadcast %1 : vector<1x256xf32> to vector<8x256xf32>
    %3 = arith.addf %0, %2 : vector<8x256xf32>
    %c0_3 = arith.constant 0 : index
    %c0_4 = arith.constant 0 : index
    %4 = vector.load %arg3[%c0_3, %c0_4] : memref<8x256xf32, #tpu.memory_space<vmem>>, vector<8x256xf32>
    tpu.vector_store %arg3[%c0_3, %c0_4], %3 {strides = array<i32>} : memref<8x256xf32, #tpu.memory_space<vmem>>, vector<8x256xf32>,
    return
  }
  func.func @transform_0(%arg0: i32) -> (i32, i32) {
    %c0_i32 = arith.constant 0 : i32
    %c0_i32_0 = arith.constant 0 : i32
    return %arg0, %c0_i32 : i32, i32
  }
  func.func @transform_1(%arg0: i32) -> (i32, i32) {
    %c0_i32 = arith.constant 0 : i32
    %c0_i32_0 = arith.constant 0 : i32
    %c0_i32_1 = arith.constant 0 : i32
    return %c0_i32, %c0_i32_0 : i32, i32
  }
  func.func @transform_2(%arg0: i32) -> (i32, i32) {
    %c0_i32 = arith.constant 0 : i32
    %c0_i32_0 = arith.constant 0 : i32
    return %arg0, %c0_i32 : i32, i32
  }
}

</mosaic_0001>

<bundles_post_ra>
// kernel: tpu_custom_call.1
= control target key start
LH: loop header
LB: loop body
LE: loop exit
PB: predicated region body
PF: predicated region fallthrough
CT: control target
= control target key end

     0   :  { %7 = vsyncpa [#allocation3], 0  ;;  %s178_s0 = inlined_call_operand.hbm [shape: f32[8,256], index: 0, kind: input, shape index: {}]   ;;  %s179_s1 = inlined_call_operand.hbm [shape: f32[1,256], index: 1, kind: input, shape index: {}]   ;;  %s180_s2 = inlined_call_operand.hbm [shape: f32[8,256], index: 2, kind: output, shape index: {}]  }
   0x1   :  { %8 = vsyncpa [#allocation6], 0 }
   0x2   :  { %9 = vsyncpa [#allocation4], 0  ;;  %s15_s11 = sshll.u32 %s178_s0, 4  ;;  %s151_s12 = smov [#allocation2]   ;;  %s16_s11 = int_to_ptr.hbm [resolvable:$true] %s15_s11 }
   0x3   :  { %s17_s13 = sshll.u32 %s151_s12, 4  ;;  %s26_s16 = sshll.u32 %s179_s1, 4  ;;  %s18_s13 = int_to_ptr.vmem [resolvable:$true] %s17_s13  ;;  %s27_s16 = int_to_ptr.hbm [resolvable:$true] %s26_s16 }
   0x4   :  { %20 = dma.hbm_to_vmem [thread:$0]  %s16_s11, 256, %s18_s13, [#allocation3]  }
   0x5   :  { %s152_s17 = smov [#allocation5]  }
   0x6   :  { %s28_s18 = sshll.u32 %s152_s17, 4  ;;  %s29_s18 = int_to_ptr.vmem [resolvable:$true] %s28_s18 }
   0x7   :  { %31 = dma.hbm_to_vmem [thread:$0]  %s27_s16, 32, %s29_s18, [#allocation6]  }
   0x8   :  { %145 = dma.done.wait [#allocation3], 256  }
   0x9   :  { %146 = vsyncadd [#allocation3], 4294967040 }
   0xa   :  { %147 = dma.done.wait [#allocation6], 32  }
   0xb   :  { %148 = vsyncadd [#allocation6], 4294967264  ;;  %v40_v0 = vld [vmem:[#allocation2] sm:$0xff]  ;;  %v42_v1 = vld [vmem:[#allocation5] sm:$0x3]  ;;  %s153_s0 = smov [#allocation7]  }
   0xc   :  { %v41_v2 = vld [vmem:[#allocation2 + $0x8] sm:$0xff]  ;;  %v44_v3 = vperm.slane %v42_v1, 0  ;;  %v45_v4 = vperm.slane %v42_v1, 1  ;;  %s57_s19 = sshll.u32 %s153_s0, 4  ;;  %s59_s1 = sshll.u32 %s180_s2, 4  ;;  %s58_s19 = int_to_ptr.vmem [resolvable:$true] %s57_s19  ;;  %s60_s1 = int_to_ptr.hbm [resolvable:$true] %s59_s1 }
   0xe   :  { %v48_v5 = vadd.f32 %v44_v3, %v40_v0  ;;  %v49_v6 = vadd.f32 %v45_v4, %v41_v2 }
  0x10   :  { %50 = vst [vmem:[#allocation7] sm:$0xff] %v48_v5 }
  0x11   :  { %51 = vst [vmem:[#allocation7 + $0x8] sm:$0xff] %v49_v6 }
  0x12   :  { %62 = dma.vmem_to_hbm [thread:$0]  %s58_s19, 256, %s60_s1, [#allocation4]  }
  0x13   :  { %149 = dma.done.wait [#allocation4], 256  }
  0x14   :  { %150 = vsyncadd [#allocation4], 4294967040 }
  0x15   :  { %67 = vsyncpa [#allocation3], 1 }
  0x16   :  { %68 = vsyncpa [#allocation6], 1 }
  0x17   :  { %69 = vsyncpa [#allocation4], 1 }

</bundles_post_ra>
